<compile_context>
chip_gen: v7x
topology: tpu7x:2x2x1
jax: 0.10.0
libtpu: 0.0.40
codegen_flags: <defaults>
</compile_context>

<pallas_src>
import functools

import jax
import jax.numpy as jnp
from jax.experimental import pallas as pl
from jax.experimental.pallas import tpu as pltpu

LANE = 128     # vreg lane width
SUBLANE = 8    # f32 sublane count
MIN_TILE = 256  # floor so per-grid-step overhead (~0.35 us) stays negligible


def _round_up(x, m):
    return ((x + m - 1) // m) * m


def _feat_classifier_kernel(x_ref, w_ref, b_ref, o_ref):
    # x tile arrives as f32 straight from HBM; cast to bf16 on the VPU
    # (hidden under the input DMA), then hit the MXU with f32 accumulation.
    x_bf16 = x_ref[...].astype(jnp.bfloat16)
    acc = jnp.dot(x_bf16, w_ref[...], preferred_element_type=jnp.float32)
    # Keep only the real classes (offset-0 lane slice, no cross-lane move) and
    # add the bias in f32.  Output block is narrow -> tiny HBM writeback.
    c = o_ref.shape[-1]
    o_ref[...] = (acc[:, :c] + b_ref[...]).astype(o_ref.dtype)


def _choose_tile(n, tile_n):
    # >=2 (ideally >=4) grid steps for moderate bags so v7x's two TensorCores
    # both get work; never exceed the (sublane-rounded) bag size.
    t = min(tile_n, max(MIN_TILE, _round_up(pl.cdiv(n, 4), SUBLANE)))
    t = min(t, _round_up(n, SUBLANE))
    return _round_up(t, SUBLANE)


@functools.partial(jax.jit, static_argnames=("tile_n",))
def _feat_classifier_pallas(x, weight, bias, *, tile_n):
    """x: (N, K) f32, weight: (K, C) f32, bias: (C,) f32 -> (N, C) f32."""
    n, k = x.shape
    _, c = weight.shape

    # Lane-dense weight for the MXU: pad C up to a multiple of 128 lanes.
    # (Tiny, 256 KiB; could be hoisted/precomputed once per model if desired.)
    c_pad = _round_up(max(c, LANE), LANE)
    w_p = jnp.zeros((k, c_pad), dtype=jnp.bfloat16)
    w_p = w_p.at[:, :c].set(weight.astype(jnp.bfloat16))
    b2 = bias.astype(jnp.float32).reshape(1, c)

    eff_tile = _choose_tile(n, tile_n)
    grid = (pl.cdiv(n, eff_tile),)  # ragged last block handled by Pallas

    out = pl.pallas_call(
        _feat_classifier_kernel,
        out_shape=jax.ShapeDtypeStruct((n, c), jnp.float32),
        grid_spec=pltpu.PrefetchScalarGridSpec(
            num_scalar_prefetch=0,
            grid=grid,
            in_specs=[
                pl.BlockSpec((eff_tile, k), lambda i: (i, 0)),   # x tile, streamed f32
                pl.BlockSpec((k, c_pad), lambda i: (0, 0)),      # weight, resident bf16
                pl.BlockSpec((1, c), lambda i: (0, 0)),          # bias, resident f32
            ],
            out_specs=pl.BlockSpec((eff_tile, c), lambda i: (i, 0)),
        ),
        compiler_params=pltpu.CompilerParams(
            # Independent N tiles -> shard across v7x's 2 TCs; neutral on v5e/v6e.
            dimension_semantics=("parallel",),
            # Headroom for larger user tiles; safe on v5e/v6e/v7x physical VMEM.
            vmem_limit_bytes=32 * 1024 * 1024,
        ),
        cost_estimate=pl.CostEstimate(
            flops=2 * n * k * c_pad,
            transcendentals=0,
            bytes_accessed=n * k * 4 + k * c_pad * 2 + c * 4 + n * c * 4,
        ),
    )(x, w_p, b2)

    return out


def feat_classifier_forward(patch_h, weight, bias, *, tile_n=1024, min_pallas_rows=0):
    """Forward pass of Feat_Classifier.

    patch_h: (1, N, 1024) or (N, 1024); weight: (1024, C); bias: (C,).
    tile_n: max rows of x processed per grid step (1024 recommended; keep
      <=2048 so the double-buffered tile fits scoped VMEM on all generations).
    min_pallas_rows: bags smaller than this fall back to a plain XLA GEMV,
      where pallas_call launch overhead would dominate.  Default 0 so the
      Pallas path is always exercised; set to ~256-512 in production.
    """
    if patch_h.ndim == 3 and patch_h.shape[0] == 1:
        x = jnp.squeeze(patch_h, axis=0)
    else:
        x = patch_h
    if x.shape[0] < min_pallas_rows:
        return x @ weight + bias  # XLA fallback for tiny bags
    return _feat_classifier_pallas(x, weight, bias, tile_n=tile_n)


def init_params(key, fc_size=1024, n_classes=2):
    # Deterministic init mimicking nn.Linear default: U(-1/sqrt(in), 1/sqrt(in))
    kw, kb = jax.random.split(key)
    bound = 1.0 / jnp.sqrt(float(fc_size))
    weight = jax.random.uniform(
        kw, (fc_size, n_classes), minval=-bound, maxval=bound, dtype=jnp.float32
    )
    bias = jax.random.uniform(
        kb, (n_classes,), minval=-bound, maxval=bound, dtype=jnp.float32
    )
    return weight, bias


def _reference(x, weight, bias):
    # Reference matching the kernel's bf16-mantissa / f32-accumulate numerics.
    # TODO(synk): numerics deviate from the PyTorch f32 Linear at the bf16
    # mantissa level (~1e-2 on logits); acceptable for classification.
    return (
        x.astype(jnp.bfloat16).astype(jnp.float32)
        @ weight.astype(jnp.bfloat16).astype(jnp.float32)
        + bias.astype(jnp.float32)
    )


if __name__ == "__main__":
    key = jax.random.PRNGKey(0)
    k_in, k_in2, k_param = jax.random.split(key, 3)

    fc_size = 1024
    n_classes = 2
    weight, bias = init_params(k_param, fc_size, n_classes)

    # Case 1: tiny bag, shape exactly as the module sees it: (1, N, 1024).
    n_patches = 8
    patch_h = jax.random.normal(k_in, (1, n_patches, fc_size), dtype=jnp.float32)
    logits = feat_classifier_forward(patch_h, weight, bias)
    jax.block_until_ready(logits)
    assert logits.shape == (n_patches, n_classes)
    ref = _reference(patch_h[0], weight, bias)
    assert jnp.allclose(logits, ref, atol=1e-2, rtol=1e-2), (
        float(jnp.max(jnp.abs(logits - ref)))
    )

    # Case 2: non-tile-multiple bag to exercise multi-tile grid + ragged tail.
    n_patches2 = 300
    patch_h2 = jax.random.normal(k_in2, (1, n_patches2, fc_size), dtype=jnp.float32)
    logits2 = feat_classifier_forward(patch_h2, weight, bias, tile_n=128)
    jax.block_until_ready(logits2)
    assert logits2.shape == (n_patches2, n_classes)
    ref2 = _reference(patch_h2[0], weight, bias)
    assert jnp.allclose(logits2, ref2, atol=1e-2, rtol=1e-2), (
        float(jnp.max(jnp.abs(logits2 - ref2)))
    )

    print("KERNEL_OK")
</pallas_src>

<mosaic_0001>
module attributes {stable_mosaic.version = 11 : i64} {
  func.func @_feat_classifier_kernel(%arg0: i32, %arg1: memref<8x1024xf32, #tpu.memory_space<vmem>>, %arg2: memref<1024x128xbf16, #tpu.memory_space<vmem>>, %arg3: memref<1x2xf32, #tpu.memory_space<vmem>>, %arg4: memref<8x2xf32, #tpu.memory_space<vmem>>) attributes {dimension_semantics = [#tpu.dimension_semantics<parallel>], iteration_bounds = array<i64: 1>, scalar_prefetch = 0 : i64, scratch_operands = 0 : i64, tpu.core_type = #tpu.core_type<tc>, window_params = [{transform_indices = @transform_0, window_bounds = array<i64: 8, 1024>}, {pipeline_mode = #tpu.pipeline_mode<synchronous>, transform_indices = @transform_1, window_bounds = array<i64: 1024, 128>}, {pipeline_mode = #tpu.pipeline_mode<synchronous>, transform_indices = @transform_2, window_bounds = array<i64: 1, 2>}, {transform_indices = @transform_3, window_bounds = array<i64: 8, 2>}]} {
    %c0 = arith.constant 0 : index
    %c0_0 = arith.constant 0 : index
    %0 = vector.load %arg1[%c0, %c0_0] : memref<8x1024xf32, #tpu.memory_space<vmem>>, vector<8x1024xf32>
    %1 = arith.truncf %0 : vector<8x1024xf32> to vector<8x1024xbf16>
    %c0_1 = arith.constant 0 : index
    %c0_2 = arith.constant 0 : index
    %2 = vector.load %arg2[%c0_1, %c0_2] : memref<1024x128xbf16, #tpu.memory_space<vmem>>, vector<1024x128xbf16>
    %cst = arith.constant dense<0.000000e+00> : vector<8x128xf32>
    %3 = tpu.matmul %1, %2, %cst {dimension_numbers = #tpu.dot_dimension_numbers<[1], [0], [0], [1], [0, 0, 1, 1], [], []>} : vector<8x1024xbf16>, vector<1024x128xbf16>, vector<8x128xf32> -> vector<8x128xf32>
    %4 = vector.extract_strided_slice %3 {offsets = [0, 0], sizes = [8, 2], strides = [1, 1]} : vector<8x128xf32> to vector<8x2xf32>
    %c0_3 = arith.constant 0 : index
    %c0_4 = arith.constant 0 : index
    %5 = vector.load %arg3[%c0_3, %c0_4] : memref<1x2xf32, #tpu.memory_space<vmem>>, vector<1x2xf32>
    %6 = vector.broadcast %5 : vector<1x2xf32> to vector<8x2xf32>
    %7 = arith.addf %4, %6 : vector<8x2xf32>
    %c0_5 = arith.constant 0 : index
    %c0_6 = arith.constant 0 : index
    %8 = vector.load %arg4[%c0_5, %c0_6] : memref<8x2xf32, #tpu.memory_space<vmem>>, vector<8x2xf32>
    tpu.vector_store %arg4[%c0_5, %c0_6], %7 {strides = array<i32>} : memref<8x2xf32, #tpu.memory_space<vmem>>, vector<8x2xf32>,
    return
  }
  func.func @transform_0(%arg0: i32) -> (i32, i32) {
    %c0_i32 = arith.constant 0 : i32
    %c0_i32_0 = arith.constant 0 : i32
    return %arg0, %c0_i32 : i32, i32
  }
  func.func @transform_1(%arg0: i32) -> (i32, i32) {
    %c0_i32 = arith.constant 0 : i32
    %c0_i32_0 = arith.constant 0 : i32
    %c0_i32_1 = arith.constant 0 : i32
    return %c0_i32, %c0_i32_0 : i32, i32
  }
  func.func @transform_2(%arg0: i32) -> (i32, i32) {
    %c0_i32 = arith.constant 0 : i32
    %c0_i32_0 = arith.constant 0 : i32
    %c0_i32_1 = arith.constant 0 : i32
    return %c0_i32, %c0_i32_0 : i32, i32
  }
  func.func @transform_3(%arg0: i32) -> (i32, i32) {
    %c0_i32 = arith.constant 0 : i32
    %c0_i32_0 = arith.constant 0 : i32
    return %arg0, %c0_i32 : i32, i32
  }
}

</mosaic_0001>

<bundles_post_ra>
// kernel: _feat_classifier_pallas.1
= control target key start
LH: loop header
LB: loop body
LE: loop exit
PB: predicated region body
PF: predicated region fallthrough
CT: control target
= control target key end

     0   :  { %vm711_vm0 = vcmask 15360   ;;  %s1176_s1 = inlined_call_operand.vmem [shape: bf16[1024,128], index: 1, kind: input, shape index: {}]   ;;  %s1177_s0 = inlined_call_operand.vmem [shape: f32[8,1024], index: 0, kind: input, shape index: {}]   ;;  %s1178_s2 = inlined_call_operand.vmem [shape: f32[1,2], index: 2, kind: input, shape index: {}]   ;;  %s1179_s3 = inlined_call_operand.vmem [shape: f32[8,2], index: 3, kind: output, shape index: {}]  }
   0x1   :  { %v870_v0 = vld [vmem:[%s1176_s1 + $0x40] sm:$0xff]   ;;  %v874_v4 = vld [vmem:[%s1176_s1 + $0x48] sm:$0xff]   ;;  %v878_v8 = vld [vmem:[%s1176_s1 + $0x50] sm:$0xff]  }
   0x2   :  { %v871_v1 = vld [vmem:[%s1176_s1 + $0xc0] sm:$0xff]   ;;  %782 = vmatprep.subr.bf16.mxu0 %v870_v0  ;;  %v875_v5 = vld [vmem:[%s1176_s1 + $0xc8] sm:$0xff]   ;;  %v879_v9 = vld [vmem:[%s1176_s1 + $0xd0] sm:$0xff]  }
   0x3   :  { %v872_v2 = vld [vmem:[%s1176_s1] sm:$0xff]   ;;  %804 = vmatprep.subr.bf16.mxu1 %v871_v1  ;;  %v876_v6 = vld [vmem:[%s1176_s1 + $0x8] sm:$0xff]   ;;  %v880_v10 = vld [vmem:[%s1176_s1 + $0x10] sm:$0xff]  }
   0x4   :  { %v873_v3 = vld [vmem:[%s1176_s1 + $0x80] sm:$0xff]   ;;  %783 = vmatpush3.bf16.msra.mxu0 %v872_v2  ;;  %v877_v7 = vld [vmem:[%s1176_s1 + $0x88] sm:$0xff]   ;;  %v881_v11 = vld [vmem:[%s1176_s1 + $0x90] sm:$0xff]  }
   0x5   :  { %805 = vmatpush3.bf16.msra.mxu1 %v873_v3  ;;  %784 = vmatprep.subr.bf16.mxu0 %v874_v4  ;;  %v882_v12 = vld [vmem:[%s1176_s1 + $0x58] sm:$0xff]   ;;  %v886_v16 = vld [vmem:[%s1176_s1 + $0x60] sm:$0xff]   ;;  %v890_v20 = vld [vmem:[%s1176_s1 + $0x68] sm:$0xff]  }
   0x6   :  { %806 = vmatprep.subr.bf16.mxu1 %v875_v5  ;;  %v883_v13 = vld [vmem:[%s1176_s1 + $0xd8] sm:$0xff]   ;;  %v887_v17 = vld [vmem:[%s1176_s1 + $0xe0] sm:$0xff]   ;;  %v891_v21 = vld [vmem:[%s1176_s1 + $0xe8] sm:$0xff]  }
   0x7   :  { %v884_v14 = vld [vmem:[%s1176_s1 + $0x18] sm:$0xff]   ;;  %v888_v18 = vld [vmem:[%s1176_s1 + $0x20] sm:$0xff]   ;;  %v892_v22 = vld [vmem:[%s1176_s1 + $0x28] sm:$0xff]  }
   0x8   :  { %785 = vmatpush3.bf16.msra.mxu0 %v876_v6  ;;  %v885_v15 = vld [vmem:[%s1176_s1 + $0x98] sm:$0xff]   ;;  %v889_v19 = vld [vmem:[%s1176_s1 + $0xa0] sm:$0xff]   ;;  %v893_v23 = vld [vmem:[%s1176_s1 + $0xa8] sm:$0xff]  }
   0x9   :  { %807 = vmatpush3.bf16.msra.mxu1 %v877_v7  ;;  %786 = vmatprep.subr.bf16.mxu0 %v878_v8  ;;  %v894_v24 = vld [vmem:[%s1176_s1 + $0x70] sm:$0xff]   ;;  %v898_v28 = vld [vmem:[%s1176_s1 + $0x78] sm:$0xff]   ;;  %v16_v32 = vld [vmem:[%s1177_s0 + $0x8] sm:$0xff] }
   0xa   :  { %808 = vmatprep.subr.bf16.mxu1 %v879_v9  ;;  %v895_v25 = vld [vmem:[%s1176_s1 + $0xf0] sm:$0xff]   ;;  %v899_v29 = vld [vmem:[%s1176_s1 + $0xf8] sm:$0xff]   ;;  %v15_v34 = vld [vmem:[%s1177_s0] sm:$0xff]  ;;  %v24_v35 = vpack.c.bf16 %v16_v32, %v16_v32 }
   0xb   :  { %v896_v26 = vld [vmem:[%s1176_s1 + $0x30] sm:$0xff]   ;;  %v900_v30 = vld [vmem:[%s1176_s1 + $0x38] sm:$0xff]   ;;  %v23_v37 = vpack.c.bf16 %v15_v34, %v15_v34  ;;  %v902_v40 = vld [vmem:[%s1176_s1 + $0x140] sm:$0xff]  }
   0xc   :  { %787 = vmatpush3.bf16.msra.mxu0 %v880_v10  ;;  %v897_v27 = vld [vmem:[%s1176_s1 + $0xb0] sm:$0xff]   ;;  %v901_v31 = vld [vmem:[%s1176_s1 + $0xb8] sm:$0xff]   ;;  %575 = vmatprep.mubr.bf16.mxu0 %v24_v35  ;;  %v903_v41 = vld [vmem:[%s1176_s1 + $0x1c0] sm:$0xff]  }
   0xd   :  { %809 = vmatpush3.bf16.msra.mxu1 %v881_v11  ;;  %788 = vmatprep.subr.bf16.mxu0 %v882_v12  ;;  %v18_v33 = vld [vmem:[%s1177_s0 + $0x18] sm:$0xff]  ;;  %v17_v38 = vld [vmem:[%s1177_s0 + $0x10] sm:$0xff]  ;;  %v904_v42 = vld [vmem:[%s1176_s1 + $0x100] sm:$0xff]  }
   0xe   :  { %810 = vmatprep.subr.bf16.mxu1 %v883_v13  ;;  %v26_v36 = vpack.c.bf16 %v18_v33, %v18_v33  ;;  %v25_v39 = vpack.c.bf16 %v17_v38, %v17_v38  ;;  %v905_v43 = vld [vmem:[%s1176_s1 + $0x180] sm:$0xff]   ;;  %v906_v44 = vld [vmem:[%s1176_s1 + $0x148] sm:$0xff]   ;;  %v910_v48 = vld [vmem:[%s1176_s1 + $0x150] sm:$0xff]  }
   0xf   :  { %v907_v45 = vld [vmem:[%s1176_s1 + $0x1c8] sm:$0xff]   ;;  %v911_v49 = vld [vmem:[%s1176_s1 + $0x1d0] sm:$0xff]   ;;  %v914_v52 = vld [vmem:[%s1176_s1 + $0x158] sm:$0xff]  }
  0x10   :  { %789 = vmatpush3.bf16.msra.mxu0 %v884_v14  ;;  %615 = vmatprep.mubr.bf16.mxu1 %v26_v36  ;;  %v908_v46 = vld [vmem:[%s1176_s1 + $0x108] sm:$0xff]   ;;  %v912_v50 = vld [vmem:[%s1176_s1 + $0x110] sm:$0xff]   ;;  %v915_v53 = vld [vmem:[%s1176_s1 + $0x1d8] sm:$0xff]  }
  0x11   :  { %811 = vmatpush3.bf16.msra.mxu1 %v885_v15  ;;  %790 = vmatprep.subr.bf16.mxu0 %v886_v16  ;;  %v909_v47 = vld [vmem:[%s1176_s1 + $0x188] sm:$0xff]   ;;  %v913_v51 = vld [vmem:[%s1176_s1 + $0x190] sm:$0xff]   ;;  %v916_v54 = vld [vmem:[%s1176_s1 + $0x118] sm:$0xff]  }
  0x12   :  { %812 = vmatprep.subr.bf16.mxu1 %v887_v17  ;;  %v917_v55 = vld [vmem:[%s1176_s1 + $0x198] sm:$0xff]   ;;  %v918_v56 = vld [vmem:[%s1176_s1 + $0x160] sm:$0xff]   ;;  %v922_v60 = vld [vmem:[%s1176_s1 + $0x168] sm:$0xff]  }
  0x13   :  { %v919_v57 = vld [vmem:[%s1176_s1 + $0x1e0] sm:$0xff]   ;;  %v923_v61 = vld [vmem:[%s1176_s1 + $0x1e8] sm:$0xff]   ;;  %v926_v0 = vld [vmem:[%s1176_s1 + $0x170] sm:$0xff]  }
  0x14   :  { %791 = vmatpush3.bf16.msra.mxu0 %v888_v18  ;;  %v920_v58 = vld [vmem:[%s1176_s1 + $0x120] sm:$0xff]   ;;  %v924_v62 = vld [vmem:[%s1176_s1 + $0x128] sm:$0xff]   ;;  %v927_v1 = vld [vmem:[%s1176_s1 + $0x1f0] sm:$0xff]  }
  0x15   :  { %813 = vmatpush3.bf16.msra.mxu1 %v889_v19  ;;  %792 = vmatprep.subr.bf16.mxu0 %v890_v20  ;;  %v921_v59 = vld [vmem:[%s1176_s1 + $0x1a0] sm:$0xff]   ;;  %v925_v63 = vld [vmem:[%s1176_s1 + $0x1a8] sm:$0xff]   ;;  %v928_v2 = vld [vmem:[%s1176_s1 + $0x130] sm:$0xff]  }
  0x16   :  { %814 = vmatprep.subr.bf16.mxu1 %v891_v21  ;;  %v929_v3 = vld [vmem:[%s1176_s1 + $0x1b0] sm:$0xff]   ;;  %v930_v4 = vld [vmem:[%s1176_s1 + $0x178] sm:$0xff]   ;;  %v20_v8 = vld [vmem:[%s1177_s0 + $0x28] sm:$0xff] }
  0x17   :  { %v931_v5 = vld [vmem:[%s1176_s1 + $0x1f8] sm:$0xff]   ;;  %v28_v10 = vpack.c.bf16 %v20_v8, %v20_v8  ;;  %v19_v12 = vld [vmem:[%s1177_s0 + $0x20] sm:$0xff]  ;;  %v21_v13 = vld [vmem:[%s1177_s0 + $0x30] sm:$0xff] }
  0x18   :  { %793 = vmatpush3.bf16.msra.mxu0 %v892_v22  ;;  %v932_v6 = vld [vmem:[%s1176_s1 + $0x138] sm:$0xff]   ;;  %v27_v14 = vpack.c.bf16 %v19_v12, %v19_v12  ;;  %v29_v15 = vpack.c.bf16 %v21_v13, %v21_v13  ;;  %v781_v38 = vld [vmem:[%s1178_s2] ss:$0 sm:$0xff] }
  0x19   :  { %815 = vmatpush3.bf16.msra.mxu1 %v893_v23  ;;  %794 = vmatprep.subr.bf16.mxu0 %v894_v24  ;;  %v933_v7 = vld [vmem:[%s1176_s1 + $0x1b8] sm:$0xff]  }
  0x1a   :  { %816 = vmatprep.subr.bf16.mxu1 %v895_v25  ;;  %v22_v9 = vld [vmem:[%s1177_s0 + $0x38] sm:$0xff] }
  0x1b   :  { %v30_v11 = vpack.c.bf16 %v22_v9, %v22_v9 }
  0x1c   :  { %795 = vmatpush3.bf16.msra.mxu0 %v896_v26 }
  0x1d   :  { %817 = vmatpush3.bf16.msra.mxu1 %v897_v27  ;;  %796 = vmatprep.subr.bf16.mxu0 %v898_v28 }
  0x1e   :  { %818 = vmatprep.subr.bf16.mxu1 %v899_v29 }
  0x20   :  { %797 = vmatpush3.bf16.msra.mxu0 %v900_v30 }
  0x21   :  { %819 = vmatpush3.bf16.msra.mxu1 %v901_v31  ;;  %826 = vmatprep.subr.bf16.mxu0 %v902_v40 }
  0x22   :  { %848 = vmatprep.subr.bf16.mxu1 %v903_v41 }
  0x23   :  { %576 = vmatmul.mubr.bf16.vlgmr.msra.gmra.mrb[0].mxu0 %v23_v37 }
  0x24   :  { %616 = vmatmul.mubr.bf16.vlgmr.msra.gmra.mrb[0].mxu1 %v25_v39  ;;  %827 = vmatpush3.bf16.msra.mxu0 %v904_v42 }
  0x25   :  { %849 = vmatpush3.bf16.msra.mxu1 %v905_v43  ;;  %828 = vmatprep.subr.bf16.mxu0 %v906_v44 }
  0x26   :  { %850 = vmatprep.subr.bf16.mxu1 %v907_v45  ;;  %655 = vmatprep.mubr.bf16.mxu0 %v28_v10 }
  0x27   :  { %695 = vmatprep.mubr.bf16.mxu1 %v30_v11 }
  0x28   :  { %829 = vmatpush3.bf16.msra.mxu0 %v908_v46 }
  0x29   :  { %851 = vmatpush3.bf16.msra.mxu1 %v909_v47  ;;  %830 = vmatprep.subr.bf16.mxu0 %v910_v48 }
  0x2a   :  { %852 = vmatprep.subr.bf16.mxu1 %v911_v49 }
  0x2c   :  { %831 = vmatpush3.bf16.msra.mxu0 %v912_v50 }
  0x2d   :  { %853 = vmatpush3.bf16.msra.mxu1 %v913_v51  ;;  %832 = vmatprep.subr.bf16.mxu0 %v914_v52 }
  0x2e   :  { %854 = vmatprep.subr.bf16.mxu1 %v915_v53 }
  0x30   :  { %833 = vmatpush3.bf16.msra.mxu0 %v916_v54 }
  0x31   :  { %855 = vmatpush3.bf16.msra.mxu1 %v917_v55  ;;  %834 = vmatprep.subr.bf16.mxu0 %v918_v56 }
  0x32   :  { %856 = vmatprep.subr.bf16.mxu1 %v919_v57 }
  0x34   :  { %835 = vmatpush3.bf16.msra.mxu0 %v920_v58 }
  0x35   :  { %857 = vmatpush3.bf16.msra.mxu1 %v921_v59  ;;  %836 = vmatprep.subr.bf16.mxu0 %v922_v60 }
  0x36   :  { %858 = vmatprep.subr.bf16.mxu1 %v923_v61 }
  0x38   :  { %837 = vmatpush3.bf16.msra.mxu0 %v924_v62 }
  0x39   :  { %859 = vmatpush3.bf16.msra.mxu1 %v925_v63  ;;  %838 = vmatprep.subr.bf16.mxu0 %v926_v0 }
  0x3a   :  { %860 = vmatprep.subr.bf16.mxu1 %v927_v1 }
  0x3c   :  { %839 = vmatpush3.bf16.msra.mxu0 %v928_v2 }
  0x3d   :  { %861 = vmatpush3.bf16.msra.mxu1 %v929_v3  ;;  %840 = vmatprep.subr.bf16.mxu0 %v930_v4 }
  0x3e   :  { %862 = vmatprep.subr.bf16.mxu1 %v931_v5 }
  0x40   :  { %841 = vmatpush3.bf16.msra.mxu0 %v932_v6 }
  0x41   :  { %863 = vmatpush3.bf16.msra.mxu1 %v933_v7 }
  0x43   :  { %656 = vmatmul.mubr.bf16.vlgmr.msra.gmra.mrb[4].mxu0 %v27_v14 }
  0x44   :  { %696 = vmatmul.mubr.bf16.vlgmr.msra.gmra.mrb[4].mxu1 %v29_v15 }
  0xf6   :  { %v798_v16 = vpop.f32.mrb[0].mxu0 }
  0xf7   :  { %v820_v17 = vpop.f32.mrb[0].mxu1  ;;  %v799_v18 = vpop.f32.mrb[1].mxu0 }
  0xf8   :  { %v821_v19 = vpop.f32.mrb[1].mxu1  ;;  %v800_v20 = vadd.f32 %v799_v18, %v798_v16  ;;  %v801_v22 = vpop.f32.mrb[2].mxu0 }
  0xf9   :  { %v822_v21 = vadd.f32 %v821_v19, %v820_v17  ;;  %v823_v23 = vpop.f32.mrb[2].mxu1  ;;  %v802_v24 = vpop.f32.mrb[3].mxu0 }
  0xfa   :  { %v824_v25 = vpop.f32.mrb[3].mxu1 }
  0xfb   :  { %v618_v26 = vadd.f32 %v822_v21, %v800_v20 }
 0x116   :  { %v842_v27 = vpop.f32.mrb[4].mxu0 }
 0x117   :  { %v864_v28 = vpop.f32.mrb[4].mxu1  ;;  %v843_v29 = vpop.f32.mrb[5].mxu0 }
 0x118   :  { %v844_v30 = vadd.f32 %v843_v29, %v842_v27  ;;  %v865_v31 = vpop.f32.mrb[5].mxu1  ;;  %v845_v32 = vpop.f32.mrb[6].mxu0 }
 0x119   :  { %v866_v33 = vadd.f32 %v865_v31, %v864_v28  ;;  %v867_v34 = vpop.f32.mrb[6].mxu1  ;;  %v846_v35 = vpop.f32.mrb[7].mxu0 }
 0x11a   :  { %v658_v36 = vadd.f32 %v844_v30, %v618_v26  ;;  %v868_v37 = vpop.f32.mrb[7].mxu1 }
 0x11c   :  { %v698_v39 = vadd.f32 %v866_v33, %v658_v36 }
 0x11e   :  { %v710_v40 = vadd.f32 %v781_v38, %v698_v39 }
 0x120   :  { %712 = vst.msk [vmem:[%s1179_s3] sm:$0xff] %vm711_vm0, %v710_v40 }

</bundles_post_ra>
